<compile_context>
chip_gen: v5e
topology: v5e:2x2
jax: 0.10.0
libtpu: 0.0.40
codegen_flags: <defaults>
</compile_context>

<pallas_src>
import jax
import jax.numpy as jnp
from jax.experimental import pallas as pl
from jax.experimental.pallas import tpu as pltpu


def _softplus_beta(x, beta=100.0, threshold=20.0):
    # Matches torch.nn.Softplus(beta=100): (1/beta)*log1p(exp(beta*x)),
    # reverting to identity when beta*x > threshold (default 20).
    inv_beta = 1.0 / beta
    bx = x * beta
    sp = jnp.log1p(jnp.exp(jnp.minimum(bx, threshold))) * inv_beta
    return jnp.where(bx > threshold, x, sp)


def embedfc_kernel(x_ref, w1_ref, b1_ref, w2_ref, b2_ref, o_ref):
    # Dots run in the operands' native dtype (bf16-native MXU path if the model
    # is bf16) with f32 accumulation; bias add + softplus stay f32.
    # TODO(synk): on v7x with bf16 models the softplus stream could run in bf16
    # (EUP/VALU are bf16-native there); kept f32 for strict parity with PyTorch.
    x = x_ref[...]
    h = jnp.dot(x, w1_ref[...], preferred_element_type=jnp.float32)
    h = h + b1_ref[...].astype(jnp.float32)
    h = _softplus_beta(h)
    h = h.astype(w2_ref.dtype)
    out = jnp.dot(h, w2_ref[...], preferred_element_type=jnp.float32)
    out = out + b2_ref[...].astype(jnp.float32)
    o_ref[...] = out.astype(o_ref.dtype)


def _round_up(a, b):
    return ((a + b - 1) // b) * b


def _sublane_multiple(dtype):
    itemsize = jnp.dtype(dtype).itemsize
    if itemsize >= 4:
        return 8
    if itemsize == 2:
        return 16
    return 32


def prepare_embedfc_params(w1, b1, w2, b2):
    """Build lane-packed block-diagonal weights/biases ONCE.

    Call this at parameter-init time (or cache per weight version) and pass the
    result to embed_fc(packed_params=...) so the einsum/tile HLOs are not
    re-executed on every forward call.
    """
    input_dim, emb_dim = w1.shape
    assert w2.shape == (emb_dim, emb_dim)
    b1 = jnp.asarray(b1).reshape(1, emb_dim)
    b2 = jnp.asarray(b2).reshape(1, emb_dim)

    if emb_dim < 128 and 128 % emb_dim == 0:
        pack = 128 // emb_dim
    else:
        # Fallback: no packing. emb_dim >= 128 is already lane-dense; emb_dim
        # that does not divide 128 falls back to masked (slower) stores but
        # stays correct.
        pack = 1

    if pack == 1:
        return dict(pack=1, input_dim=input_dim, emb_dim=emb_dim,
                    w1b=w1, b1b=b1, w2b=w2, b2b=b2)

    in_p = pack * input_dim
    out_p = pack * emb_dim
    eye1 = jnp.eye(pack, dtype=w1.dtype)
    eye2 = jnp.eye(pack, dtype=w2.dtype)
    w1b = jnp.einsum("pq,km->pkqm", eye1, w1).reshape(in_p, out_p)
    w2b = jnp.einsum("pq,km->pkqm", eye2, w2).reshape(out_p, out_p)
    b1b = jnp.tile(b1, (1, pack))
    b2b = jnp.tile(b2, (1, pack))
    return dict(pack=pack, input_dim=input_dim, emb_dim=emb_dim,
                w1b=w1b, b1b=b1b, w2b=w2b, b2b=b2b)


def embed_fc(x, w1=None, b1=None, w2=None, b2=None, *,
             packed_params=None, tile_packed_rows=2048):
    """x: (..., input_dim) -> (B, emb_dim), B = prod of leading dims.

    Either pass raw (w1, b1, w2, b2) or a cached prepare_embedfc_params() result.
    """
    if packed_params is None:
        packed_params = prepare_embedfc_params(w1, b1, w2, b2)
    p = packed_params
    pack, input_dim, emb_dim = p["pack"], p["input_dim"], p["emb_dim"]
    w1b, b1b, w2b, b2b = p["w1b"], p["b1b"], p["w2b"], p["b2b"]

    dtype = x.dtype
    in_p = pack * input_dim
    out_p = pack * emb_dim

    x2d = x.reshape(-1, input_dim)  # same semantics as torch .view(-1, input_dim)
    B = x2d.shape[0]

    # Packed-row tiling: dtype-dependent sublane multiple, padded ragged tail.
    sub = _sublane_multiple(dtype)
    bp = -(-B // pack)                                   # packed rows (unpadded)
    bp_aligned = _round_up(bp, sub)
    tbp = min(_round_up(max(int(tile_packed_rows), 1), sub), bp_aligned)
    # v7x has 2 TensorCores: give the batch axis >= 2 grid steps whenever each
    # half still carries a healthy per-step DMA (>= ~1024 packed rows ~ 0.5 MiB).
    half = _round_up(-(-bp // 2), sub)
    if half >= 1024:
        tbp = min(tbp, half)
    bp_pad = _round_up(bp, tbp)
    b_pad = bp_pad * pack

    # Only pay for padding when actually needed; otherwise this is a free
    # contiguous reshape (no extra HBM pass over x).
    if b_pad == B:
        xp = x2d.reshape(bp_pad, in_p)
    else:
        xp = jnp.pad(x2d, ((0, b_pad - B), (0, 0))).reshape(bp_pad, in_p)

    grid = (bp_pad // tbp,)

    itemsize = jnp.dtype(dtype).itemsize
    cost = pl.CostEstimate(
        # FLOPs of the block-diagonal matmuls actually executed (incl. zero MACs).
        flops=2 * bp_pad * (in_p * out_p + out_p * out_p),
        # exp AND log1p per hidden element of the packed slab.
        transcendentals=2 * bp_pad * out_p,
        bytes_accessed=(xp.size * xp.dtype.itemsize
                        + w1b.size * w1b.dtype.itemsize
                        + w2b.size * w2b.dtype.itemsize
                        + b1b.size * b1b.dtype.itemsize
                        + b2b.size * b2b.dtype.itemsize
                        + bp_pad * out_p * itemsize),
    )

    # VMEM budget per tile (tbp=2048, emb=32, f32): x 128 KiB + out 1 MiB,
    # double-buffered, + ~74 KiB resident weights -> well under the scoped
    # VMEM default on every generation (incl. v7x's 64 MiB physical VMEM).
    out_packed = pl.pallas_call(
        embedfc_kernel,
        out_shape=jax.ShapeDtypeStruct((bp_pad, out_p), dtype),
        grid=grid,
        in_specs=[
            pl.BlockSpec((tbp, in_p), lambda i: (i, 0)),       # x: tiled over batch
            pl.BlockSpec((in_p, out_p), lambda i: (0, 0)),     # weights: VMEM-resident
            pl.BlockSpec((1, out_p), lambda i: (0, 0)),
            pl.BlockSpec((out_p, out_p), lambda i: (0, 0)),
            pl.BlockSpec((1, out_p), lambda i: (0, 0)),
        ],
        out_specs=pl.BlockSpec((tbp, out_p), lambda i: (i, 0)),
        compiler_params=pltpu.CompilerParams(
            dimension_semantics=("parallel",)),
        cost_estimate=cost,
    )(xp, w1b, b1b, w2b, b2b)

    # Unpack the lane-dense slab back to (B, emb_dim) and drop the padding.
    return out_packed.reshape(b_pad, emb_dim)[:B]


if __name__ == "__main__":
    input_dim = 4
    emb_dim = 32

    key = jax.random.PRNGKey(0)
    kx, kw1, kb1, kw2, kb2, kx2 = jax.random.split(key, 6)

    # Leading dims are flattened by the module's x.view(-1, input_dim).
    x = jax.random.normal(kx, (3, 2, input_dim), dtype=jnp.float32)   # B=6: pad path
    w1 = jax.random.normal(kw1, (input_dim, emb_dim), dtype=jnp.float32) * 0.1
    b1 = jax.random.normal(kb1, (1, emb_dim), dtype=jnp.float32) * 0.1
    w2 = jax.random.normal(kw2, (emb_dim, emb_dim), dtype=jnp.float32) * 0.1
    b2 = jax.random.normal(kb2, (1, emb_dim), dtype=jnp.float32) * 0.1

    # Build the lane-packed weights once (hoisted out of the per-call path).
    params = prepare_embedfc_params(w1, b1, w2, b2)

    out = embed_fc(x, packed_params=params)
    jax.block_until_ready(out)

    # Pure-JAX reference check of the fused kernel.
    x2d = x.reshape(-1, input_dim)
    ref = _softplus_beta(x2d @ w1 + b1) @ w2 + b2
    assert out.shape == (x2d.shape[0], emb_dim)
    assert jnp.allclose(out, ref, atol=1e-5, rtol=1e-5)

    # Second case: B is already a multiple of pack * tile -> zero-copy (no pad) path.
    x2 = jax.random.normal(kx2, (128, input_dim), dtype=jnp.float32)
    out2 = embed_fc(x2, packed_params=params)
    jax.block_until_ready(out2)
    ref2 = _softplus_beta(x2 @ w1 + b1) @ w2 + b2
    assert out2.shape == (128, emb_dim)
    assert jnp.allclose(out2, ref2, atol=1e-5, rtol=1e-5)

    print("KERNEL_OK")
</pallas_src>

<mosaic_0001>
module attributes {stable_mosaic.version = 11 : i64} {
  func.func @embedfc_kernel(%arg0: i32, %arg1: memref<8x16xf32, #tpu.memory_space<vmem>>, %arg2: memref<16x128xf32, #tpu.memory_space<vmem>>, %arg3: memref<1x128xf32, #tpu.memory_space<vmem>>, %arg4: memref<128x128xf32, #tpu.memory_space<vmem>>, %arg5: memref<1x128xf32, #tpu.memory_space<vmem>>, %arg6: memref<8x128xf32, #tpu.memory_space<vmem>>) attributes {dimension_semantics = [#tpu.dimension_semantics<parallel>], iteration_bounds = array<i64: 1>, scalar_prefetch = 0 : i64, scratch_operands = 0 : i64, tpu.core_type = #tpu.core_type<tc>, window_params = [{transform_indices = @transform_0, window_bounds = array<i64: 8, 16>}, {pipeline_mode = #tpu.pipeline_mode<synchronous>, transform_indices = @transform_1, window_bounds = array<i64: 16, 128>}, {pipeline_mode = #tpu.pipeline_mode<synchronous>, transform_indices = @transform_2, window_bounds = array<i64: 1, 128>}, {pipeline_mode = #tpu.pipeline_mode<synchronous>, transform_indices = @transform_3, window_bounds = array<i64: 128, 128>}, {pipeline_mode = #tpu.pipeline_mode<synchronous>, transform_indices = @transform_4, window_bounds = array<i64: 1, 128>}, {transform_indices = @transform_5, window_bounds = array<i64: 8, 128>}]} {
    %c0 = arith.constant 0 : index
    %c0_0 = arith.constant 0 : index
    %0 = vector.load %arg1[%c0, %c0_0] : memref<8x16xf32, #tpu.memory_space<vmem>>, vector<8x16xf32>
    %c0_1 = arith.constant 0 : index
    %c0_2 = arith.constant 0 : index
    %1 = vector.load %arg2[%c0_1, %c0_2] : memref<16x128xf32, #tpu.memory_space<vmem>>, vector<16x128xf32>
    %cst = arith.constant dense<0.000000e+00> : vector<8x128xf32>
    %2 = tpu.matmul %0, %1, %cst {dimension_numbers = #tpu.dot_dimension_numbers<[1], [0], [0], [1], [0, 0, 1, 1], [], []>} : vector<8x16xf32>, vector<16x128xf32>, vector<8x128xf32> -> vector<8x128xf32>
    %c0_3 = arith.constant 0 : index
    %c0_4 = arith.constant 0 : index
    %3 = vector.load %arg3[%c0_3, %c0_4] : memref<1x128xf32, #tpu.memory_space<vmem>>, vector<1x128xf32>
    %4 = vector.broadcast %3 : vector<1x128xf32> to vector<8x128xf32>
    %5 = arith.addf %2, %4 : vector<8x128xf32>
    %cst_5 = arith.constant 1.000000e+02 : f32
    %6 = vector.broadcast %cst_5 : f32 to vector<8x128xf32>
    %7 = arith.mulf %5, %6 : vector<8x128xf32>
    %cst_6 = arith.constant 2.000000e+01 : f32
    %8 = vector.broadcast %cst_6 : f32 to vector<8x128xf32>
    %9 = arith.minimumf %7, %8 : vector<8x128xf32>
    %10 = math.exp %9 : vector<8x128xf32>
    %11 = math.log1p %10 : vector<8x128xf32>
    %cst_7 = arith.constant 0.00999999977 : f32
    %12 = vector.broadcast %cst_7 : f32 to vector<8x128xf32>
    %13 = arith.mulf %11, %12 : vector<8x128xf32>
    %cst_8 = arith.constant 2.000000e+01 : f32
    %14 = vector.broadcast %cst_8 : f32 to vector<8x128xf32>
    %15 = arith.cmpf ogt, %7, %14 : vector<8x128xf32>
    %16 = arith.select %15, %5, %13 : vector<8x128xi1>, vector<8x128xf32>
    %c0_9 = arith.constant 0 : index
    %c0_10 = arith.constant 0 : index
    %17 = vector.load %arg4[%c0_9, %c0_10] : memref<128x128xf32, #tpu.memory_space<vmem>>, vector<128x128xf32>
    %cst_11 = arith.constant dense<0.000000e+00> : vector<8x128xf32>
    %18 = tpu.matmul %16, %17, %cst_11 {dimension_numbers = #tpu.dot_dimension_numbers<[1], [0], [0], [1], [0, 0, 1, 1], [], []>} : vector<8x128xf32>, vector<128x128xf32>, vector<8x128xf32> -> vector<8x128xf32>
    %c0_12 = arith.constant 0 : index
    %c0_13 = arith.constant 0 : index
    %19 = vector.load %arg5[%c0_12, %c0_13] : memref<1x128xf32, #tpu.memory_space<vmem>>, vector<1x128xf32>
    %20 = vector.broadcast %19 : vector<1x128xf32> to vector<8x128xf32>
    %21 = arith.addf %18, %20 : vector<8x128xf32>
    %c0_14 = arith.constant 0 : index
    %c0_15 = arith.constant 0 : index
    %22 = vector.load %arg6[%c0_14, %c0_15] : memref<8x128xf32, #tpu.memory_space<vmem>>, vector<8x128xf32>
    tpu.vector_store %arg6[%c0_14, %c0_15], %21 {strides = array<i32>} : memref<8x128xf32, #tpu.memory_space<vmem>>, vector<8x128xf32>,
    return
  }
  func.func @transform_0(%arg0: i32) -> (i32, i32) {
    %c0_i32 = arith.constant 0 : i32
    %c0_i32_0 = arith.constant 0 : i32
    return %arg0, %c0_i32 : i32, i32
  }
  func.func @transform_1(%arg0: i32) -> (i32, i32) {
    %c0_i32 = arith.constant 0 : i32
    %c0_i32_0 = arith.constant 0 : i32
    %c0_i32_1 = arith.constant 0 : i32
    return %c0_i32, %c0_i32_0 : i32, i32
  }
  func.func @transform_2(%arg0: i32) -> (i32, i32) {
    %c0_i32 = arith.constant 0 : i32
    %c0_i32_0 = arith.constant 0 : i32
    %c0_i32_1 = arith.constant 0 : i32
    return %c0_i32, %c0_i32_0 : i32, i32
  }
  func.func @transform_3(%arg0: i32) -> (i32, i32) {
    %c0_i32 = arith.constant 0 : i32
    %c0_i32_0 = arith.constant 0 : i32
    %c0_i32_1 = arith.constant 0 : i32
    return %c0_i32, %c0_i32_0 : i32, i32
  }
  func.func @transform_4(%arg0: i32) -> (i32, i32) {
    %c0_i32 = arith.constant 0 : i32
    %c0_i32_0 = arith.constant 0 : i32
    %c0_i32_1 = arith.constant 0 : i32
    return %c0_i32, %c0_i32_0 : i32, i32
  }
  func.func @transform_5(%arg0: i32) -> (i32, i32) {
    %c0_i32 = arith.constant 0 : i32
    %c0_i32_0 = arith.constant 0 : i32
    return %arg0, %c0_i32 : i32, i32
  }
}

</mosaic_0001>

<bundles_post_ra>
// kernel: tpu_custom_call.1
= control target key start
LH: loop header
LB: loop body
LE: loop exit
PB: predicated region body
PF: predicated region fallthrough
CT: control target
= control target key end

     0   :  { %10 = vsyncpa [#allocation3], 0  ;;  %s341_s0 = inlined_call_operand.hbm [shape: f32[8,16], index: 0, kind: input, shape index: {}]   ;;  %s342_s1 = inlined_call_operand.hbm [shape: f32[16,128], index: 1, kind: input, shape index: {}]   ;;  %s343_s2 = inlined_call_operand.vmem [shape: f32[1,128], index: 2, kind: input, shape index: {}]   ;;  %s344_s3 = inlined_call_operand.hbm [shape: f32[128,128], index: 3, kind: input, shape index: {}]   ;;  %s345_s4 = inlined_call_operand.vmem [shape: f32[1,128], index: 4, kind: input, shape index: {}]   ;;  %s346_s5 = inlined_call_operand.hbm [shape: f32[8,128], index: 5, kind: output, shape index: {}]  }
   0x1   :  { %11 = vsyncpa [#allocation6], 0  ;;  %s28_s20 = sshll.u32 %s342_s1, 4  ;;  %s29_s20 = int_to_ptr.hbm [resolvable:$true] %s28_s20 }
   0x2   :  { %12 = vsyncpa [#allocation4], 0  ;;  %s287_s21 = smov [#allocation5]   ;;  %s18_s25 = sshll.u32 %s341_s0, 4  ;;  %s19_s25 = int_to_ptr.hbm [resolvable:$true] %s18_s25 }
   0x3   :  { %s30_s22 = sshll.u32 %s287_s21, 4  ;;  %s288_s26 = smov 128   ;;  %s31_s22 = int_to_ptr.vmem [resolvable:$true] %s30_s22 }
   0x4   :  { %s289_s27 = smov 8   ;;  %s290_s28 = smov [#allocation2]  }
   0x5   :  { %36 = dma.hbm_to_vmem [thread:$0]  %s29_s20, 256, %s31_s22, [#allocation6], %s288_s26, %s288_s26, %s289_s27  }
   0x6   :  { %s20_s29 = sshll.u32 %s290_s28, 4  ;;  %s43_s7 = sshll.u32 %s344_s3, 4  ;;  %s21_s29 = int_to_ptr.vmem [resolvable:$true] %s20_s29  ;;  %s44_s7 = int_to_ptr.hbm [resolvable:$true] %s43_s7 }
   0x7   :  { %23 = dma.hbm_to_vmem [thread:$0]  %s19_s25, 128, %s21_s29, [#allocation3]  }
   0x8   :  { %s291_s1 = smov [#allocation7]  }
   0x9   :  { %s45_s8 = sshll.u32 %s291_s1, 4  ;;  %s46_s8 = int_to_ptr.vmem [resolvable:$true] %s45_s8 }
   0xa   :  { %51 = dma.hbm_to_vmem [thread:$0]  %s44_s7, 2048, %s46_s8, [#allocation6], %s288_s26, %s288_s26, %s289_s27  }
   0xb   :  { %281 = dma.done.wait [#allocation3], 128  }
   0xc   :  { %282 = vsyncadd [#allocation3], 4294967168 }
   0xd   :  { %283 = dma.done.wait [#allocation6], 2304  }
   0xe   :  { %284 = vsyncadd [#allocation6], 4294964992  ;;  %v68_v0 = vld [vmem:[#allocation5 + $0x8] sm:$0xff]  ;;  %v67_v1 = vld [vmem:[#allocation5] sm:$0xff]  ;;  %vm73_vm0 = vcmask 130048   ;;  %s292_s10 = smov [#allocation8]  }
   0xf   :  { %91 = vmatpush.msra.mxu0 %v68_v0  ;;  %v66_v2 = vld [vmem:[#allocation2] sm:$0xff]  ;;  %v128_v3 = vld [vmem:[#allocation7 + $0x78] sm:$0xff]  ;;  %v127_v4 = vld [vmem:[#allocation7 + $0x70] sm:$0xff]  ;;  %s159_s11 = sshll.u32 %s292_s10, 4  ;;  %s161_s14 = sshll.u32 %s346_s5, 4  ;;  %s160_s11 = int_to_ptr.vmem [resolvable:$true] %s159_s11  ;;  %s162_s14 = int_to_ptr.hbm [resolvable:$true] %s161_s14 }
  0x10   :  { %133 = vmatpush.msra.mxu1 %v128_v3  ;;  %v126_v5 = vld [vmem:[#allocation7 + $0x68] sm:$0xff]  ;;  %v125_v6 = vld [vmem:[#allocation7 + $0x60] sm:$0xff]  ;;  %v124_v7 = vld [vmem:[#allocation7 + $0x58] sm:$0xff] }
  0x11   :  { %92 = vmatpush.msra.mxu0 %v67_v1  ;;  %v123_v8 = vld [vmem:[#allocation7 + $0x50] sm:$0xff]  ;;  %v122_v9 = vld [vmem:[#allocation7 + $0x48] sm:$0xff]  ;;  %v121_v10 = vld [vmem:[#allocation7 + $0x40] sm:$0xff] }
  0x12   :  { %172 = vmatmul.msk.f32.vlgmr.msra.gmra.mxu0 %vm73_vm0, %v66_v2  ;;  %134 = vmatpush.msra.mxu1 %v127_v4  ;;  %v120_v11 = vld [vmem:[#allocation7 + $0x38] sm:$0xff]  ;;  %v119_v12 = vld [vmem:[#allocation7 + $0x30] sm:$0xff]  ;;  %v118_v13 = vld [vmem:[#allocation7 + $0x28] sm:$0xff] }
  0x13   :  { %v117_v14 = vld [vmem:[#allocation7 + $0x20] sm:$0xff]  ;;  %v116_v15 = vld [vmem:[#allocation7 + $0x18] sm:$0xff]  ;;  %v115_v16 = vld [vmem:[#allocation7 + $0x10] sm:$0xff] }
  0x14   :  { %135 = vmatpush.msra.mxu1 %v126_v5  ;;  %v114_v17 = vld [vmem:[#allocation7 + $0x8] sm:$0xff]  ;;  %v113_v18 = vld [vmem:[#allocation7] sm:$0xff] }
  0x15   :  { %v179_v19 = vld [vmem:[%s343_s2] ss:$0 sm:$0xff] }
  0x16   :  { %136 = vmatpush.msra.mxu1 %v125_v6  ;;  %v180_v36 = vld [vmem:[%s345_s4] ss:$0 sm:$0xff] }
  0x18   :  { %137 = vmatpush.msra.mxu1 %v124_v7 }
  0x1a   :  { %138 = vmatpush.msra.mxu1 %v123_v8 }
  0x1c   :  { %139 = vmatpush.msra.mxu1 %v122_v9 }
  0x1e   :  { %140 = vmatpush.msra.mxu1 %v121_v10 }
  0x20   :  { %141 = vmatpush.msra.mxu1 %v120_v11 }
  0x22   :  { %142 = vmatpush.msra.mxu1 %v119_v12 }
  0x24   :  { %143 = vmatpush.msra.mxu1 %v118_v13 }
  0x26   :  { %144 = vmatpush.msra.mxu1 %v117_v14 }
  0x28   :  { %145 = vmatpush.msra.mxu1 %v116_v15 }
  0x2a   :  { %146 = vmatpush.msra.mxu1 %v115_v16 }
  0x2c   :  { %147 = vmatpush.msra.mxu1 %v114_v17 }
  0x2e   :  { %148 = vmatpush.msra.mxu1 %v113_v18 }
  0x8f   :  { %v94_v20 = vpop.f32.mrf.mxu0 }
  0x90   :  { %v95_v21 = vadd.f32 %v179_v19, %v94_v20 }
  0x92   :  { %v97_v22 = vmul.f32 100.0, %v95_v21 }
  0x94   :  { %v98_v23 = vmin.f32 %v97_v22, 20.0  ;;  %vm111_vm2 = vcmp.gt.f32.partialorder %v97_v22, 20.0 }
  0x96   :  { %v99_v24 = vmul.f32 1.442695, %v98_v23 }
  0x98   :  { %181 = vpow2.f32 %v99_v24 }
  0x9e   :  { %v182_v25 = vpop.eup %181 }
  0x9f   :  { %v101_v26 = vadd.f32 1.0, %v182_v25  ;;  %v104_v27 = vmul.f32 -0.5, %v182_v25  ;;  %v107_v29 = vand.u32 2147483647, %v182_v25 }
  0xa1   :  { %183 = vlog2.f32 %v101_v26  ;;  %v105_v28 = vadd.f32 1.0, %v104_v27  ;;  %vm108_vm1 = vcmp.lt.f32.partialorder %v107_v29, 0.0004427343 }
  0xa3   :  { %v106_v32 = vmul.f32 %v182_v25, %v105_v28 }
  0xa7   :  { %v184_v30 = vpop.eup %183 }
  0xa8   :  { %v103_v31 = vmul.f32 0.6931472, %v184_v30 }
  0xaa   :  { %v109_v33 = vsel %vm108_vm1, %v106_v32, %v103_v31 }
  0xab   :  { %v110_v34 = vmul.f32 0.01, %v109_v33 }
  0xad   :  { %v112_v35 = vsel %vm111_vm2, %v95_v21, %v110_v34 }
  0xae   :  { %149 = vmatmul.f32.vlgmr.msra.gmra.mxu1 %v112_v35 }
 0x12b   :  { %v150_v37 = vpop.f32.mrf.mxu1 }
 0x12c   :  { %v151_v38 = vadd.f32 %v180_v36, %v150_v37 }
 0x12e   :  { %153 = vst [vmem:[#allocation8] sm:$0xff] %v151_v38 }
 0x12f   :  { %164 = dma.vmem_to_hbm [thread:$0]  %s160_s11, 128, %s162_s14, [#allocation4]  }
 0x130   :  { %285 = dma.done.wait [#allocation4], 128  }
 0x131   :  { %286 = vsyncadd [#allocation4], 4294967168 }
 0x132   :  { %169 = vsyncpa [#allocation3], 1 }
 0x133   :  { %170 = vsyncpa [#allocation6], 1 }
 0x134   :  { %171 = vsyncpa [#allocation4], 1 }

</bundles_post_ra>
